<compile_context>
chip_gen: v6e
topology: v6e:2x2x1
jax: 0.10.0
libtpu: 0.0.40
codegen_flags: <defaults>
</compile_context>

<pallas_src>
import jax
import jax.numpy as jnp
from jax.experimental import pallas as pl
from jax.experimental.pallas import tpu as pltpu

IN_F = 128
HID_F = 32
OUT_F = 1
NEG_SLOPE = 0.01  # F.leaky_relu default


def _leaky_relu(x):
    return jnp.where(x > 0, x, NEG_SLOPE * x)


def _round_up(n, m):
    return ((n + m - 1) // m) * m


def mlp_kernel(x_ref, w1_ref, b1_ref, w2_ref, b2_ref, o_ref):
    # One batch tile fully resident in VMEM; both layers + activations fused.
    x = x_ref[...]

    # Layer 1 on the MXU: (tile, 128) @ (128, 32), f32 accumulation.
    # f32 inputs: HIGHEST precision (free — kernel is HBM-bound) for close
    # parity with the PyTorch f32 reference.  bf16 inputs: native single pass.
    prec = (jax.lax.Precision.HIGHEST if x.dtype == jnp.float32
            else jax.lax.Precision.DEFAULT)
    h = jnp.dot(x, w1_ref[...], preferred_element_type=jnp.float32,
                precision=prec)
    h = _leaky_relu(h + b1_ref[...].astype(jnp.float32))

    # Layer 2: out_features == 1 -> skip the degenerate MXU matmul; use a VPU
    # elementwise multiply + cross-lane (XLU) sum instead.
    y = jnp.sum(h * w2_ref[...].astype(jnp.float32), axis=-1, keepdims=True)
    y = _leaky_relu(y + b2_ref[...].astype(jnp.float32))

    o_ref[...] = y.astype(o_ref.dtype)


def linear_mlp(x, w1, b1, w2, b2, *, tile_b=4096, out_dtype=jnp.float32):
    """x: (B, 128) -> (B, 1), output dtype is explicit (default f32).

    Weight layouts:
      w1: (IN_F, HID_F)   (transposed vs. nn.Linear's (out, in)); may be bf16
      b1: (1, HID_F)
      w2: (OUT_F, HID_F)  == (1, 32), same layout as nn.Linear.weight
      b2: (1, OUT_F)
    """
    B = x.shape[0]

    # Sublane packing: 16-row alignment for bf16 inputs, 8 for 32-bit dtypes.
    row_align = 16 if x.dtype == jnp.bfloat16 else 8

    # Batch tile: as large as possible (per-grid-step overhead ~0.35 us makes
    # small tiles overhead-bound), but clamped to ~ceil(B/2) so there are at
    # least two *balanced* tiles whenever the batch allows it (feeds both v7x
    # TensorCores via dimension_semantics=("parallel",)).
    tile = min(tile_b, max(row_align, _round_up(pl.cdiv(B, 2), row_align)))
    Bp = _round_up(B, tile)
    if Bp != B:
        x = jnp.pad(x, ((0, Bp - B), (0, 0)))
    num_tiles = Bp // tile

    in_bytes = (Bp * IN_F * x.dtype.itemsize
                + IN_F * HID_F * w1.dtype.itemsize
                + HID_F * b1.dtype.itemsize
                + OUT_F * HID_F * w2.dtype.itemsize
                + OUT_F * b2.dtype.itemsize)
    out_bytes = Bp * OUT_F * jnp.dtype(out_dtype).itemsize
    cost = pl.CostEstimate(
        flops=2 * Bp * IN_F * HID_F + 4 * Bp * HID_F + 4 * Bp,
        transcendentals=0,
        bytes_accessed=in_bytes + out_bytes,
    )

    out = pl.pallas_call(
        mlp_kernel,
        out_shape=jax.ShapeDtypeStruct((Bp, OUT_F), out_dtype),
        grid_spec=pltpu.PrefetchScalarGridSpec(
            num_scalar_prefetch=0,
            grid=(num_tiles,),
            in_specs=[
                pl.BlockSpec((tile, IN_F), lambda i: (i, 0)),    # x tile
                pl.BlockSpec((IN_F, HID_F), lambda i: (0, 0)),   # W1 (full)
                pl.BlockSpec((1, HID_F), lambda i: (0, 0)),      # b1 (full)
                pl.BlockSpec((OUT_F, HID_F), lambda i: (0, 0)),  # W2 row (full)
                pl.BlockSpec((1, OUT_F), lambda i: (0, 0)),      # b2 (full)
            ],
            out_specs=pl.BlockSpec((tile, OUT_F), lambda i: (i, 0)),
        ),
        compiler_params=pltpu.CompilerParams(
            dimension_semantics=("parallel",),
        ),
        cost_estimate=cost,
    )(x, w1, b1, w2, b2)

    # Padded rows computed garbage (leaky_relu of biases); slice them off.
    return out[:B]


def init_params(key):
    # Mimic nn.Linear's uniform(-1/sqrt(fan_in), +1/sqrt(fan_in)) init.
    k1, k2, k3, k4 = jax.random.split(key, 4)
    bound1 = 1.0 / jnp.sqrt(IN_F)
    bound2 = 1.0 / jnp.sqrt(HID_F)
    w1 = jax.random.uniform(k1, (IN_F, HID_F), jnp.float32, -bound1, bound1)
    b1 = jax.random.uniform(k2, (1, HID_F), jnp.float32, -bound1, bound1)
    w2 = jax.random.uniform(k3, (OUT_F, HID_F), jnp.float32, -bound2, bound2)
    b2 = jax.random.uniform(k4, (1, OUT_F), jnp.float32, -bound2, bound2)
    return w1, b1, w2, b2


def _reference(x, w1, b1, w2, b2):
    h = x @ w1 + b1
    h = jnp.where(h > 0, h, NEG_SLOPE * h)
    y = h @ w2.T + b2
    return jnp.where(y > 0, y, NEG_SLOPE * y)


if __name__ == "__main__":
    key = jax.random.PRNGKey(0)
    kp, kx0, kx1 = jax.random.split(key, 3)
    w1, b1, w2, b2 = init_params(kp)

    # Small ragged batch (padding path; 2 tiny balanced tiles).
    x_small = jax.random.normal(kx0, (10, IN_F), jnp.float32)
    out_small = jax.block_until_ready(linear_mlp(x_small, w1, b1, w2, b2))
    assert out_small.shape == (10, OUT_F) and out_small.dtype == jnp.float32
    assert jnp.allclose(out_small, _reference(x_small, w1, b1, w2, b2),
                        atol=1e-5, rtol=1e-5)

    # Larger ragged f32 batch: default tile -> two balanced ~2056-row tiles.
    x_big = jax.random.normal(kx1, (4100, IN_F), jnp.float32)
    out_big = jax.block_until_ready(linear_mlp(x_big, w1, b1, w2, b2))
    assert out_big.shape == (4100, OUT_F)
    assert jnp.allclose(out_big, _reference(x_big, w1, b1, w2, b2),
                        atol=1e-5, rtol=1e-5)

    # bf16 input path (halves HBM reads): caller passes bf16 x / W1, f32 out.
    x_bf = x_big.astype(jnp.bfloat16)
    w1_bf = w1.astype(jnp.bfloat16)
    out_bf = jax.block_until_ready(linear_mlp(x_bf, w1_bf, b1, w2, b2))
    assert out_bf.shape == (4100, OUT_F) and out_bf.dtype == jnp.float32
    ref_bf = _reference(x_bf.astype(jnp.float32), w1_bf.astype(jnp.float32),
                        b1, w2, b2)
    assert jnp.allclose(out_bf, ref_bf, atol=1e-4, rtol=1e-4)

    print("KERNEL_OK")
</pallas_src>

<mosaic_0001>
module attributes {stable_mosaic.version = 11 : i64} {
  func.func @mlp_kernel(%arg0: i32, %arg1: memref<8x128xf32, #tpu.memory_space<vmem>>, %arg2: memref<128x32xf32, #tpu.memory_space<vmem>>, %arg3: memref<1x32xf32, #tpu.memory_space<vmem>>, %arg4: memref<1x32xf32, #tpu.memory_space<vmem>>, %arg5: memref<1x1xf32, #tpu.memory_space<vmem>>, %arg6: memref<8x1xf32, #tpu.memory_space<vmem>>) attributes {dimension_semantics = [#tpu.dimension_semantics<parallel>], iteration_bounds = array<i64: 2>, scalar_prefetch = 0 : i64, scratch_operands = 0 : i64, tpu.core_type = #tpu.core_type<tc>, window_params = [{transform_indices = @transform_0, window_bounds = array<i64: 8, 128>}, {pipeline_mode = #tpu.pipeline_mode<synchronous>, transform_indices = @transform_1, window_bounds = array<i64: 128, 32>}, {pipeline_mode = #tpu.pipeline_mode<synchronous>, transform_indices = @transform_2, window_bounds = array<i64: 1, 32>}, {pipeline_mode = #tpu.pipeline_mode<synchronous>, transform_indices = @transform_3, window_bounds = array<i64: 1, 32>}, {pipeline_mode = #tpu.pipeline_mode<synchronous>, transform_indices = @transform_4, window_bounds = array<i64: 1, 1>}, {transform_indices = @transform_5, window_bounds = array<i64: 8, 1>}]} {
    %c0 = arith.constant 0 : index
    %c0_0 = arith.constant 0 : index
    %0 = vector.load %arg1[%c0, %c0_0] : memref<8x128xf32, #tpu.memory_space<vmem>>, vector<8x128xf32>
    %c0_1 = arith.constant 0 : index
    %c0_2 = arith.constant 0 : index
    %1 = vector.load %arg2[%c0_1, %c0_2] : memref<128x32xf32, #tpu.memory_space<vmem>>, vector<128x32xf32>
    %cst = arith.constant dense<0.000000e+00> : vector<8x32xf32>
    %2 = tpu.matmul %0, %1, %cst {dimension_numbers = #tpu.dot_dimension_numbers<[1], [0], [0], [1], [0, 0, 1, 1], [], []>, precision = #tpu.contract_precision<fp32>} : vector<8x128xf32>, vector<128x32xf32>, vector<8x32xf32> -> vector<8x32xf32>
    %c0_3 = arith.constant 0 : index
    %c0_4 = arith.constant 0 : index
    %3 = vector.load %arg3[%c0_3, %c0_4] : memref<1x32xf32, #tpu.memory_space<vmem>>, vector<1x32xf32>
    %4 = vector.broadcast %3 : vector<1x32xf32> to vector<8x32xf32>
    %5 = arith.addf %2, %4 : vector<8x32xf32>
    %cst_5 = arith.constant 0.000000e+00 : f32
    %6 = vector.broadcast %cst_5 : f32 to vector<8x32xf32>
    %7 = arith.cmpf ogt, %5, %6 : vector<8x32xf32>
    %cst_6 = arith.constant 0.00999999977 : f32
    %8 = vector.broadcast %cst_6 : f32 to vector<8x32xf32>
    %9 = arith.mulf %8, %5 : vector<8x32xf32>
    %10 = arith.select %7, %5, %9 : vector<8x32xi1>, vector<8x32xf32>
    %c0_7 = arith.constant 0 : index
    %c0_8 = arith.constant 0 : index
    %11 = vector.load %arg4[%c0_7, %c0_8] : memref<1x32xf32, #tpu.memory_space<vmem>>, vector<1x32xf32>
    %12 = vector.broadcast %11 : vector<1x32xf32> to vector<8x32xf32>
    %13 = arith.mulf %10, %12 : vector<8x32xf32>
    %cst_9 = arith.constant dense<0.000000e+00> : vector<8xf32>
    %14 = vector.multi_reduction <add>, %13, %cst_9 [1] : vector<8x32xf32> to vector<8xf32>
    %15 = vector.shape_cast %14 : vector<8xf32> to vector<8x1xf32>
    %c0_10 = arith.constant 0 : index
    %c0_11 = arith.constant 0 : index
    %16 = vector.load %arg5[%c0_10, %c0_11] : memref<1x1xf32, #tpu.memory_space<vmem>>, vector<1x1xf32>
    %17 = vector.broadcast %16 : vector<1x1xf32> to vector<8x1xf32>
    %18 = arith.addf %15, %17 : vector<8x1xf32>
    %cst_12 = arith.constant 0.000000e+00 : f32
    %19 = vector.broadcast %cst_12 : f32 to vector<8x1xf32>
    %20 = arith.cmpf ogt, %18, %19 : vector<8x1xf32>
    %cst_13 = arith.constant 0.00999999977 : f32
    %21 = vector.broadcast %cst_13 : f32 to vector<8x1xf32>
    %22 = arith.mulf %21, %18 : vector<8x1xf32>
    %23 = arith.select %20, %18, %22 : vector<8x1xi1>, vector<8x1xf32>
    %c0_14 = arith.constant 0 : index
    %c0_15 = arith.constant 0 : index
    %24 = vector.load %arg6[%c0_14, %c0_15] : memref<8x1xf32, #tpu.memory_space<vmem>>, vector<8x1xf32>
    tpu.vector_store %arg6[%c0_14, %c0_15], %23 {strides = array<i32>} : memref<8x1xf32, #tpu.memory_space<vmem>>, vector<8x1xf32>,
    return
  }
  func.func @transform_0(%arg0: i32) -> (i32, i32) {
    %c0_i32 = arith.constant 0 : i32
    %c0_i32_0 = arith.constant 0 : i32
    return %arg0, %c0_i32 : i32, i32
  }
  func.func @transform_1(%arg0: i32) -> (i32, i32) {
    %c0_i32 = arith.constant 0 : i32
    %c0_i32_0 = arith.constant 0 : i32
    %c0_i32_1 = arith.constant 0 : i32
    return %c0_i32, %c0_i32_0 : i32, i32
  }
  func.func @transform_2(%arg0: i32) -> (i32, i32) {
    %c0_i32 = arith.constant 0 : i32
    %c0_i32_0 = arith.constant 0 : i32
    %c0_i32_1 = arith.constant 0 : i32
    return %c0_i32, %c0_i32_0 : i32, i32
  }
  func.func @transform_3(%arg0: i32) -> (i32, i32) {
    %c0_i32 = arith.constant 0 : i32
    %c0_i32_0 = arith.constant 0 : i32
    %c0_i32_1 = arith.constant 0 : i32
    return %c0_i32, %c0_i32_0 : i32, i32
  }
  func.func @transform_4(%arg0: i32) -> (i32, i32) {
    %c0_i32 = arith.constant 0 : i32
    %c0_i32_0 = arith.constant 0 : i32
    %c0_i32_1 = arith.constant 0 : i32
    return %c0_i32, %c0_i32_0 : i32, i32
  }
  func.func @transform_5(%arg0: i32) -> (i32, i32) {
    %c0_i32 = arith.constant 0 : i32
    %c0_i32_0 = arith.constant 0 : i32
    return %arg0, %c0_i32 : i32, i32
  }
}

</mosaic_0001>

<bundles_post_ra>
// kernel: tpu_custom_call.1
= control target key start
LH: loop header
LB: loop body
LE: loop exit
PB: predicated region body
PF: predicated region fallthrough
CT: control target
= control target key end

     0   :  { %s1345_s20 = smov 0   ;;  %s1796_s0 = inlined_call_operand.vmem [shape: f32[16,128], index: 0, kind: input, shape index: {}]   ;;  %s1797_s1 = inlined_call_operand.vmem [shape: f32[128,32], index: 1, kind: input, shape index: {}]   ;;  %s1798_s2 = inlined_call_operand.vmem [shape: f32[1,32], index: 2, kind: input, shape index: {}]   ;;  %s1799_s3 = inlined_call_operand.vmem [shape: f32[1,32], index: 3, kind: input, shape index: {}]   ;;  %s1800_s4 = inlined_call_operand.<no memory space> [shape: f32[1,1], index: 4, kind: input, shape index: {}]   ;;  %s1801_s5 = inlined_call_operand.vmem [shape: f32[16,1], index: 5, kind: output, shape index: {}]  }
   0x1   :  { %v10_v0 = vstv %s1800_s4 }
   0x2   :  { %11 = vst [vmem:[#allocation2] sm:$0x1] %v10_v0 }
   0x3 LB: > { %s968_s21 = sadd.s32 4294967295, %s1308_s20   ;;  %p972_p0 = scmp.ge.s32.totalorder %s1308_s20, 1  ;;  %s1308_s20 = sphi %s1345_s20, %s17_s20  }
   0x4   : > { %p188_p1 = scmp.lt.s32.totalorder %s1308_s20, 3 }
   0x6   : > { %p189_p2 = pnand %p972_p0, %p188_p1 }
   0x7   : > { %p1364_p3 = scmp.lt.s32.totalorder (!%p189_p2), %s968_s21, 1 }
   0x8   : > { %192 = sbr.rel (%p189_p2) target bundleno = 468 (0x1d4), region = 40 }
   0xd   : > { %v238_v1 = vld [vmem:[%s1797_s1 + $0x78] sm:$0xff]  ;;  %v237_v2 = vld [vmem:[%s1797_s1 + $0x70] sm:$0xff]  ;;  %v236_v3 = vld [vmem:[%s1797_s1 + $0x68] sm:$0xff]  ;;  %v1310_v4 = vmov 0.0   ;;  %vm1311_vm0 = vmmov 0   ;;  %s1804_s21 = smov (!%p1364_p3, %s968_s21), 1 }
   0xe   : > { %1082 = vmatprep.subr.mxu0 %v1310_v4  ;;  %v1369_v5 = vand.u32 4294901760, %v238_v1  ;;  %v1371_v6 = vand.u32 4294901760, %v237_v2  ;;  %v1373_v7 = vand.u32 4294901760, %v236_v3  ;;  %v235_v8 = vld [vmem:[%s1797_s1 + $0x60] sm:$0xff]  ;;  %1117 = vmatprep.subr.mxu1 %v1310_v4  ;;  %v234_v9 = vld [vmem:[%s1797_s1 + $0x58] sm:$0xff]  ;;  %v233_v10 = vld [vmem:[%s1797_s1 + $0x50] sm:$0xff] }
   0xf   : > { %v1385_v11 = vand.u32 4294901760, %v235_v8  ;;  %v1387_v12 = vand.u32 4294901760, %v234_v9  ;;  %v1389_v13 = vand.u32 4294901760, %v233_v10  ;;  %v232_v14 = vld [vmem:[%s1797_s1 + $0x48] sm:$0xff]  ;;  %v231_v15 = vld [vmem:[%s1797_s1 + $0x40] sm:$0xff]  ;;  %1114 = vmatprep.mubr.msk.f32.mxu0 %vm1311_vm0, %v1310_v4  ;;  %1149 = vmatprep.mubr.msk.f32.mxu1 %vm1311_vm0, %v1310_v4  ;;  %v230_v20 = vld [vmem:[%s1797_s1 + $0x38] sm:$0xff] }
  0x10   : > { %1083 = vmatpush3.msra.mxu0 %v1369_v5  ;;  %v1403_v16 = vsub.f32 %v238_v1, %v1369_v5  ;;  %v1406_v17 = vsub.f32 %v237_v2, %v1371_v6  ;;  %v1408_v18 = vand.u32 4294901760, %v232_v14  ;;  %v1411_v19 = vsub.f32 %v236_v3, %v1373_v7  ;;  %v229_v27 = vld [vmem:[%s1797_s1 + $0x30] sm:$0xff]  ;;  %s973_s17 = sshll.u32 %s1804_s21, 3  ;;  %v228_v37 = vld [vmem:[%s1797_s1 + $0x28] sm:$0xff]  ;;  %v227_v42 = vld [vmem:[%s1797_s1 + $0x20] sm:$0xff] }
  0x11   : > { %1084 = vmatprep.subr.mxu0 %v1310_v4  ;;  %v1424_v21 = vsub.f32 %v235_v8, %v1385_v11  ;;  %v1427_v22 = vsub.f32 %v234_v9, %v1387_v12  ;;  %v1433_v26 = vand.u32 4294901760, %v231_v15  ;;  %v1440_v29 = vand.u32 4294901760, %v230_v20  ;;  %s217_s25 = scalar_lea.vmem %s1796_s0, %s973_s17  ;;  %v226_v50 = vld [vmem:[%s1797_s1 + $0x18] sm:$0xff]  ;;  %v225_v55 = vld [vmem:[%s1797_s1 + $0x10] sm:$0xff]  ;;  %v224_v61 = vld [vmem:[%s1797_s1 + $0x8] sm:$0xff]  ;;  %s221_s15 = scalar_lea.vmem %s1801_s5, %s973_s17 }
  0x12   : > { %1085 = vmatpush3.msra.mxu0 %v1371_v6  ;;  %v340_v23 = vand.u32 4294901760, %v1403_v16  ;;  %v347_v24 = vand.u32 4294901760, %v1406_v17  ;;  %v354_v25 = vand.u32 4294901760, %v1411_v19  ;;  %v1444_v31 = vsub.f32 %v233_v10, %v1389_v13  ;;  %v222_v51 = vld [vmem:[%s217_s25] sm:$0xff] }
  0x13   : > { %1086 = vmatprep.subr.mxu0 %v1310_v4  ;;  %v361_v28 = vand.u32 4294901760, %v1424_v21  ;;  %v368_v30 = vand.u32 4294901760, %v1427_v22  ;;  %v1458_v35 = vsub.f32 %v232_v14, %v1408_v18  ;;  %v1461_v36 = vand.u32 4294901760, %v229_v27  ;;  %v223_v8 = vld [vmem:[%s1797_s1] sm:$0xff] }
  0x14   : > { %1087 = vmatpush3.msra.mxu0 %v1373_v7  ;;  %v341_v32 = vsub.f32 %v1403_v16, %v340_v23  ;;  %v348_v33 = vsub.f32 %v1406_v17, %v347_v24  ;;  %v355_v34 = vsub.f32 %v1411_v19, %v354_v25  ;;  %v375_v41 = vand.u32 4294901760, %v1444_v31 }
  0x15   : > { %1088 = vmatprep.subr.mxu0 %v1310_v4  ;;  %v362_v40 = vsub.f32 %v1424_v21, %v361_v28  ;;  %v369_v43 = vsub.f32 %v1427_v22, %v368_v30  ;;  %v1484_v44 = vsub.f32 %v231_v15, %v1433_v26  ;;  %v1487_v46 = vand.u32 4294901760, %v228_v37 }
  0x16   : > { %1089 = vmatpush3.msra.mxu0 %v1385_v11  ;;  %v342_v38 = vand.u32 4294901760, %v341_v32  ;;  %v349_v39 = vand.u32 4294901760, %v348_v33  ;;  %v356_v45 = vand.u32 4294901760, %v355_v34  ;;  %v382_v47 = vand.u32 4294901760, %v1458_v35 }
  0x17   : > { %1090 = vmatprep.subr.mxu0 %v1310_v4  ;;  %v1491_v48 = vsub.f32 %v230_v20, %v1440_v29  ;;  %v1495_v49 = vand.u32 4294901760, %v227_v42  ;;  %v363_v52 = vand.u32 4294901760, %v362_v40  ;;  %v376_v53 = vsub.f32 %v1444_v31, %v375_v41 }
  0x18   : > { %1091 = vmatpush3.msra.mxu0 %v1387_v12  ;;  %1118 = vmatpush3.msra.mxu1 %v342_v38  ;;  %v389_v54 = vand.u32 4294901760, %v1484_v44  ;;  %v1509_v56 = vsub.f32 %v229_v27, %v1461_v36  ;;  %v370_v57 = vand.u32 4294901760, %v369_v43  ;;  %v383_v59 = vsub.f32 %v1458_v35, %v382_v47 }
  0x19   : > { %1092 = vmatprep.subr.mxu0 %v1310_v4  ;;  %1119 = vmatprep.subr.mxu1 %v1310_v4  ;;  %v396_v58 = vand.u32 4294901760, %v1491_v48  ;;  %v1518_v60 = vand.u32 4294901760, %v226_v50  ;;  %v1524_v62 = vsub.f32 %v228_v37, %v1487_v46  ;;  %v1526_v63 = vand.u32 4294901760, %v222_v51 }
  0x1a   : > { %1093 = vmatpush3.msra.mxu0 %v1389_v13  ;;  %1120 = vmatpush3.msra.mxu1 %v349_v39  ;;  %v1530_v0 = vand.u32 4294901760, %v225_v55  ;;  %v377_v1 = vand.u32 4294901760, %v376_v53  ;;  %v390_v2 = vsub.f32 %v1484_v44, %v389_v54  ;;  %v403_v3 = vand.u32 4294901760, %v1509_v56 }
  0x1b   : > { %1094 = vmatprep.subr.mxu0 %v1310_v4  ;;  %1121 = vmatprep.subr.mxu1 %v1310_v4  ;;  %v1541_v9 = vsub.f32 %v227_v42, %v1495_v49  ;;  %v397_v10 = vsub.f32 %v1491_v48, %v396_v58  ;;  %v1548_v14 = vand.u32 4294901760, %v224_v61  ;;  %v384_v15 = vand.u32 4294901760, %v383_v59 }
  0x1c   : > { %1095 = vmatpush3.msra.mxu0 %v1408_v18  ;;  %1122 = vmatpush3.msra.mxu1 %v356_v45  ;;  %v410_v20 = vand.u32 4294901760, %v1524_v62  ;;  %v1553_v27 = vsub.f32 %v222_v51, %v1526_v63  ;;  %v1556_v32 = vsub.f32 %v226_v50, %v1518_v60  ;;  %v1560_v33 = vand.u32 4294901760, %v223_v8 }
  0x1d   : > { %1096 = vmatprep.subr.mxu0 %v1310_v4  ;;  %1123 = vmatprep.subr.mxu1 %v1310_v4  ;;  %v391_v34 = vand.u32 4294901760, %v390_v2  ;;  %v404_v37 = vsub.f32 %v1509_v56, %v403_v3  ;;  %v417_v38 = vand.u32 4294901760, %v1541_v9  ;;  %v1568_v39 = vsub.f32 %v225_v55, %v1530_v0 }
  0x1e   : > { %1097 = vmatpush3.msra.mxu0 %v1433_v26  ;;  %1124 = vmatpush3.msra.mxu1 %v363_v52  ;;  %v398_v40 = vand.u32 4294901760, %v397_v10  ;;  %v411_v42 = vsub.f32 %v1524_v62, %v410_v20  ;;  %v329_v43 = vand.u32 4294901760, %v1553_v27  ;;  %v424_v45 = vand.u32 4294901760, %v1556_v32 }
  0x1f   : > { %1098 = vmatprep.subr.mxu0 %v1310_v4  ;;  %1125 = vmatprep.subr.mxu1 %v1310_v4  ;;  %v1579_v50 = vsub.f32 %v224_v61, %v1548_v14  ;;  %v405_v51 = vand.u32 4294901760, %v404_v37  ;;  %v418_v52 = vsub.f32 %v1541_v9, %v417_v38  ;;  %v431_v53 = vand.u32 4294901760, %v1568_v39 }
  0x20   : > { %1099 = vmatpush3.msra.mxu0 %v1440_v29  ;;  %1126 = vmatpush3.msra.mxu1 %v370_v57  ;;  %v1589_v55 = vsub.f32 %v223_v8, %v1560_v33  ;;  %v412_v57 = vand.u32 4294901760, %v411_v42  ;;  %v330_v59 = vsub.f32 %v1553_v27, %v329_v43  ;;  %v425_v61 = vsub.f32 %v1556_v32, %v424_v45 }
  0x21   : > { %1100 = vmatprep.subr.mxu0 %v1310_v4  ;;  %1127 = vmatprep.subr.mxu1 %v1310_v4  ;;  %v419_v2 = vand.u32 4294901760, %v418_v52  ;;  %v432_v8 = vsub.f32 %v1568_v39, %v431_v53  ;;  %vm898_vm2 = vcmask 261120   ;;  %vm913_vm4 = vcmask 7168  }
  0x22   : > { %1101 = vmatpush3.msra.mxu0 %v1461_v36  ;;  %1128 = vmatpush3.msra.mxu1 %v377_v1  ;;  %v438_v1 = vand.u32 4294901760, %v1579_v50  ;;  %v445_v10 = vand.u32 4294901760, %v1589_v55 }
  0x23   : > { %1102 = vmatprep.subr.mxu0 %v1310_v4  ;;  %1129 = vmatprep.subr.mxu1 %v1310_v4 }
  0x24   : > { %1103 = vmatpush3.msra.mxu0 %v1487_v46  ;;  %1130 = vmatpush3.msra.mxu1 %v384_v15  ;;  %v331_v15 = vand.u32 4294901760, %v330_v59  ;;  %v439_v37 = vsub.f32 %v1579_v50, %v438_v1  ;;  %v446_v42 = vsub.f32 %v1589_v55, %v445_v10 }
  0x25   : > { %1104 = vmatprep.subr.mxu0 %v1310_v4  ;;  %1131 = vmatprep.subr.mxu1 %v1310_v4 }
  0x26   : > { %1105 = vmatpush3.msra.mxu0 %v1495_v49  ;;  %1132 = vmatpush3.msra.mxu1 %v391_v34  ;;  %v426_v34 = vand.u32 4294901760, %v425_v61  ;;  %v447_v52 = vand.u32 4294901760, %v446_v42 }
  0x27   : > { %1106 = vmatprep.subr.mxu0 %v1310_v4  ;;  %1133 = vmatprep.subr.mxu1 %v1310_v4 }
  0x28   : > { %1107 = vmatpush3.msra.mxu0 %v1518_v60  ;;  %1134 = vmatpush3.msra.mxu1 %v398_v40  ;;  %v433_v40 = vand.u32 4294901760, %v432_v8 }
  0x29   : > { %1108 = vmatprep.subr.mxu0 %v1310_v4  ;;  %1135 = vmatprep.subr.mxu1 %v1310_v4 }
  0x2a   : > { %1109 = vmatpush3.msra.mxu0 %v1530_v0  ;;  %1136 = vmatpush3.msra.mxu1 %v405_v51  ;;  %v440_v51 = vand.u32 4294901760, %v439_v37 }
  0x2b   : > { %1110 = vmatprep.subr.mxu0 %v1310_v4  ;;  %1137 = vmatprep.subr.mxu1 %v1310_v4 }
  0x2c   : > { %1111 = vmatpush3.msra.mxu0 %v1548_v14  ;;  %1138 = vmatpush3.msra.mxu1 %v412_v57 }
  0x2d   : > { %1112 = vmatprep.subr.mxu0 %v1310_v4  ;;  %1139 = vmatprep.subr.mxu1 %v1310_v4 }
  0x2e   : > { %1113 = vmatpush3.msra.mxu0 %v1560_v33  ;;  %1140 = vmatpush3.msra.mxu1 %v419_v2 }
  0x2f   : > { %1141 = vmatprep.subr.mxu1 %v1310_v4  ;;  %1152 = vmatprep.subr.mxu0 %v1310_v4 }
  0x30   : > { %1115 = vmatmul.mubr.f32.vlgmr.msra.gmra.mxu0 %v331_v15  ;;  %1142 = vmatpush3.msra.mxu1 %v426_v34 }
  0x31   : > { %1153 = vmatpush3.msra.mxu0 %v1403_v16  ;;  %1143 = vmatprep.subr.mxu1 %v1310_v4 }
  0x32   : > { %1154 = vmatprep.subr.mxu0 %v1310_v4  ;;  %1144 = vmatpush3.msra.mxu1 %v433_v40 }
  0x33   : > { %1155 = vmatpush3.msra.mxu0 %v1406_v17  ;;  %1145 = vmatprep.subr.mxu1 %v1310_v4 }
  0x34   : > { %1156 = vmatprep.subr.mxu0 %v1310_v4  ;;  %1146 = vmatpush3.msra.mxu1 %v440_v51 }
  0x35   : > { %1157 = vmatpush3.msra.mxu0 %v1411_v19  ;;  %1147 = vmatprep.subr.mxu1 %v1310_v4 }
  0x36   : > { %1158 = vmatprep.subr.mxu0 %v1310_v4  ;;  %1148 = vmatpush3.msra.mxu1 %v447_v52 }
  0x37   : > { %1159 = vmatpush3.msra.mxu0 %v1424_v21  ;;  %1150 = vmatmul.mubr.f32.vlgmr.msra.gmra.mxu1 %v1526_v63 }
  0x38   : > { %1160 = vmatprep.subr.mxu0 %v1310_v4  ;;  %1187 = vmatprep.subr.mxu1 %v1310_v4 }
  0x39   : > { %1161 = vmatpush3.msra.mxu0 %v1427_v22  ;;  %1188 = vmatpush3.msra.mxu1 %v1369_v5 }
  0x3a   : > { %1162 = vmatprep.subr.mxu0 %v1310_v4  ;;  %1189 = vmatprep.subr.mxu1 %v1310_v4 }
  0x3b   : > { %1163 = vmatpush3.msra.mxu0 %v1444_v31  ;;  %1190 = vmatpush3.msra.mxu1 %v1371_v6  ;;  %v976_v31 = vld [vmem:[%s1799_s3] ss:$0 sm:$0xff] }
  0x3c   : > { %1164 = vmatprep.subr.mxu0 %v1310_v4  ;;  %1191 = vmatprep.subr.mxu1 %v1310_v4 }
  0x3d   : > { %1165 = vmatpush3.msra.mxu0 %v1458_v35  ;;  %1192 = vmatpush3.msra.mxu1 %v1373_v7 }
  0x3e   : > { %1166 = vmatprep.subr.mxu0 %v1310_v4  ;;  %1193 = vmatprep.subr.mxu1 %v1310_v4 }
  0x3f   : > { %1167 = vmatpush3.msra.mxu0 %v1484_v44  ;;  %1194 = vmatpush3.msra.mxu1 %v1385_v11  ;;  %v977_v44 = vld [vmem:[#allocation2] ss:$0 sm:$0xff] }
  0x40   : > { %1168 = vmatprep.subr.mxu0 %v1310_v4  ;;  %1195 = vmatprep.subr.mxu1 %v1310_v4 }
  0x41   : > { %1169 = vmatpush3.msra.mxu0 %v1491_v48  ;;  %1196 = vmatpush3.msra.mxu1 %v1387_v12 }
  0x42   : > { %1170 = vmatprep.subr.mxu0 %v1310_v4  ;;  %1197 = vmatprep.subr.mxu1 %v1310_v4 }
  0x43   : > { %1171 = vmatpush3.msra.mxu0 %v1509_v56  ;;  %1198 = vmatpush3.msra.mxu1 %v1389_v13 }
  0x44   : > { %1172 = vmatprep.subr.mxu0 %v1310_v4  ;;  %1199 = vmatprep.subr.mxu1 %v1310_v4 }
  0x45   : > { %1173 = vmatpush3.msra.mxu0 %v1524_v62  ;;  %1200 = vmatpush3.msra.mxu1 %v1408_v18 }
  0x46   : > { %1174 = vmatprep.subr.mxu0 %v1310_v4  ;;  %1201 = vmatprep.subr.mxu1 %v1310_v4 }
  0x47   : > { %1175 = vmatpush3.msra.mxu0 %v1541_v9  ;;  %1202 = vmatpush3.msra.mxu1 %v1433_v26 }
  0x48   : > { %1176 = vmatprep.subr.mxu0 %v1310_v4  ;;  %1203 = vmatprep.subr.mxu1 %v1310_v4 }
  0x49   : > { %1177 = vmatpush3.msra.mxu0 %v1556_v32  ;;  %1204 = vmatpush3.msra.mxu1 %v1440_v29 }
  0x4a   : > { %1178 = vmatprep.subr.mxu0 %v1310_v4  ;;  %1205 = vmatprep.subr.mxu1 %v1310_v4 }
  0x4b   : > { %1179 = vmatpush3.msra.mxu0 %v1568_v39  ;;  %1206 = vmatpush3.msra.mxu1 %v1461_v36 }
  0x4c   : > { %1180 = vmatprep.subr.mxu0 %v1310_v4  ;;  %1207 = vmatprep.subr.mxu1 %v1310_v4 }
  0x4d   : > { %1181 = vmatpush3.msra.mxu0 %v1579_v50  ;;  %1208 = vmatpush3.msra.mxu1 %v1487_v46 }
  0x4e   : > { %1182 = vmatprep.subr.mxu0 %v1310_v4  ;;  %1209 = vmatprep.subr.mxu1 %v1310_v4 }
  0x4f   : > { %1183 = vmatpush3.msra.mxu0 %v1589_v55  ;;  %1184 = vmatprep.mubr.msk.f32.mxu0 %vm1311_vm0, %v1310_v4 }
  0x50   : > { %1210 = vmatpush3.msra.mxu1 %v1495_v49  ;;  %1185 = vmatmul.mubr.f32.vlgmr.msra.gmra.mxu0 %v1553_v27 }
  0x51   : > { %1211 = vmatprep.subr.mxu1 %v1310_v4  ;;  %1222 = vmatprep.subr.mxu0 %v1310_v4 }
  0x52   : > { %1212 = vmatpush3.msra.mxu1 %v1518_v60  ;;  %1223 = vmatpush3.msra.mxu0 %v340_v23 }
  0x53   : > { %1213 = vmatprep.subr.mxu1 %v1310_v4  ;;  %1224 = vmatprep.subr.mxu0 %v1310_v4 }
  0x54   : > { %1214 = vmatpush3.msra.mxu1 %v1530_v0  ;;  %1225 = vmatpush3.msra.mxu0 %v347_v24 }
  0x55   : > { %1215 = vmatprep.subr.mxu1 %v1310_v4  ;;  %1226 = vmatprep.subr.mxu0 %v1310_v4 }
  0x56   : > { %1216 = vmatpush3.msra.mxu1 %v1548_v14  ;;  %1227 = vmatpush3.msra.mxu0 %v354_v25 }
  0x57   : > { %1217 = vmatprep.subr.mxu1 %v1310_v4  ;;  %1228 = vmatprep.subr.mxu0 %v1310_v4 }
  0x58   : > { %1218 = vmatpush3.msra.mxu1 %v1560_v33  ;;  %1219 = vmatprep.mubr.msk.f32.mxu1 %vm1311_vm0, %v1310_v4 }
  0x59   : > { %1229 = vmatpush3.msra.mxu0 %v361_v28  ;;  %1220 = vmatmul.mubr.f32.vlgmr.msra.gmra.mxu1 %v329_v43 }
  0x5a   : > { %1230 = vmatprep.subr.mxu0 %v1310_v4  ;;  %1257 = vmatprep.subr.mxu1 %v1310_v4 }
  0x5b   : > { %1231 = vmatpush3.msra.mxu0 %v368_v30  ;;  %1258 = vmatpush3.msra.mxu1 %v1369_v5 }
  0x5c   : > { %1232 = vmatprep.subr.mxu0 %v1310_v4  ;;  %1259 = vmatprep.subr.mxu1 %v1310_v4 }
  0x5d   : > { %1233 = vmatpush3.msra.mxu0 %v375_v41  ;;  %1260 = vmatpush3.msra.mxu1 %v1371_v6 }
  0x5e   : > { %1234 = vmatprep.subr.mxu0 %v1310_v4  ;;  %1261 = vmatprep.subr.mxu1 %v1310_v4 }
  0x5f   : > { %1235 = vmatpush3.msra.mxu0 %v382_v47  ;;  %1262 = vmatpush3.msra.mxu1 %v1373_v7 }
  0x60   : > { %1236 = vmatprep.subr.mxu0 %v1310_v4  ;;  %1263 = vmatprep.subr.mxu1 %v1310_v4 }
  0x61   : > { %1237 = vmatpush3.msra.mxu0 %v389_v54  ;;  %1264 = vmatpush3.msra.mxu1 %v1385_v11 }
  0x62   : > { %1238 = vmatprep.subr.mxu0 %v1310_v4  ;;  %1265 = vmatprep.subr.mxu1 %v1310_v4 }
  0x63   : > { %1239 = vmatpush3.msra.mxu0 %v396_v58  ;;  %1266 = vmatpush3.msra.mxu1 %v1387_v12 }
  0x64   : > { %1240 = vmatprep.subr.mxu0 %v1310_v4  ;;  %1267 = vmatprep.subr.mxu1 %v1310_v4 }
  0x65   : > { %1241 = vmatpush3.msra.mxu0 %v403_v3  ;;  %1268 = vmatpush3.msra.mxu1 %v1389_v13 }
  0x66   : > { %1242 = vmatprep.subr.mxu0 %v1310_v4  ;;  %1269 = vmatprep.subr.mxu1 %v1310_v4 }
  0x67   : > { %1243 = vmatpush3.msra.mxu0 %v410_v20  ;;  %1270 = vmatpush3.msra.mxu1 %v1408_v18  ;;  %v975_v18 = vld [vmem:[%s1798_s2] ss:$0 sm:$0xff] }
  0x68   : > { %1244 = vmatprep.subr.mxu0 %v1310_v4  ;;  %1271 = vmatprep.subr.mxu1 %v1310_v4 }
  0x69   : > { %1245 = vmatpush3.msra.mxu0 %v417_v38  ;;  %1272 = vmatpush3.msra.mxu1 %v1433_v26 }
  0x6a   : > { %1246 = vmatprep.subr.mxu0 %v1310_v4  ;;  %1273 = vmatprep.subr.mxu1 %v1310_v4 }
  0x6b   : > { %1247 = vmatpush3.msra.mxu0 %v424_v45  ;;  %1274 = vmatpush3.msra.mxu1 %v1440_v29 }
  0x6c   : > { %1248 = vmatprep.subr.mxu0 %v1310_v4  ;;  %1275 = vmatprep.subr.mxu1 %v1310_v4 }
  0x6d   : > { %1249 = vmatpush3.msra.mxu0 %v431_v53  ;;  %1276 = vmatpush3.msra.mxu1 %v1461_v36 }
  0x6e   : > { %1250 = vmatprep.subr.mxu0 %v1310_v4  ;;  %1277 = vmatprep.subr.mxu1 %v1310_v4 }
  0x6f   : > { %1251 = vmatpush3.msra.mxu0 %v438_v1  ;;  %1278 = vmatpush3.msra.mxu1 %v1487_v46 }
  0x70   : > { %1252 = vmatprep.subr.mxu0 %v1310_v4  ;;  %1279 = vmatprep.subr.mxu1 %v1310_v4 }
  0x71   : > { %1253 = vmatpush3.msra.mxu0 %v445_v10  ;;  %1254 = vmatprep.mubr.msk.f32.mxu0 %vm1311_vm0, %v1310_v4 }
  0x72   : > { %1280 = vmatpush3.msra.mxu1 %v1495_v49  ;;  %1255 = vmatmul.mubr.f32.vlgmr.msra.gmra.mxu0 %v1526_v63 }
  0x73   : > { %1281 = vmatprep.subr.mxu1 %v1310_v4  ;;  %1289 = vmatprep.mubr.msk.f32.mxu1 %vm1311_vm0, %v1310_v4 }
  0x74   : > { %1282 = vmatpush3.msra.mxu1 %v1518_v60 }
  0x75   : > { %1283 = vmatprep.subr.mxu1 %v1310_v4 }
  0x76   : > { %1284 = vmatpush3.msra.mxu1 %v1530_v0 }
  0x77   : > { %1285 = vmatprep.subr.mxu1 %v1310_v4 }
  0x78   : > { %1286 = vmatpush3.msra.mxu1 %v1548_v14 }
  0x79   : > { %1287 = vmatprep.subr.mxu1 %v1310_v4 }
  0x7a   : > { %1288 = vmatpush3.msra.mxu1 %v1560_v33 }
  0x7b   : > { %1290 = vmatmul.mubr.f32.vlgmr.msra.gmra.mxu1 %v1526_v63 }
  0xf0   : > { %v333_v5 = vpop.f32.mrf.mxu0 }
  0xf1   : > { %v334_v19 = vadd.f32 %v975_v18, %v333_v5 }
  0xf2   : > { %v1116_v6 = vpop.f32.mrf.mxu0 }
  0xf7   : > { %v484_v7 = vpop.f32.mrf.mxu1 }
  0xf8   : > { %v485_v22 = vadd.f32 %v484_v7, %v334_v19 }
  0xf9   : > { %v1151_v11 = vpop.f32.mrf.mxu1 }
 0x110   : > { %v588_v12 = vpop.f32.mrf.mxu0 }
 0x111   : > { %v589_v23 = vadd.f32 %v588_v12, %v485_v22 }
 0x112   : > { %v1186_v13 = vpop.f32.mrf.mxu0 }
 0x119   : > { %v677_v16 = vpop.f32.mrf.mxu1 }
 0x11a   : > { %v678_v24 = vadd.f32 %v677_v16, %v589_v23 }
 0x11b   : > { %v1221_v17 = vpop.f32.mrf.mxu1 }
 0x132   : > { %v796_v21 = vpop.f32.mrf.mxu0 }
 0x133   : > { %v797_v25 = vadd.f32 %v796_v21, %v678_v24 }
 0x134   : > { %v1256_v4 = vpop.f32.mrf.mxu0 }
 0x13b   : > { %v883_v26 = vpop.f32.mrf.mxu1 }
 0x13c   : > { %v884_v28 = vadd.f32 %v883_v26, %v797_v25 }
 0x13d   : > { %v1291_v29 = vpop.f32.mrf.mxu1 }
 0x13e   : > { %v888_v30 = vmul.f32 0.01, %v884_v28  ;;  %vm887_vm1 = vcmp.gt.f32.partialorder %v884_v28, 0.0 }
 0x140   : > { %v889_v35 = vsel %vm887_vm1, %v884_v28, %v888_v30 }
 0x141   : > { %v897_v36 = vmul.f32 %v976_v31, %v889_v35 }
 0x143   : > { %v899_v41 = vsel %vm898_vm2, %v897_v36, 0.0 }
 0x144   : > { %900 = vadd.xlane.f32.xlu0 %v899_v41 }
 0x1cd   : > { %v901_v46 = vpop.xlane.xlu0 %900 }
 0x1ce   : > { %v909_v47 = vadd.f32 %v977_v44, %v901_v46 }
 0x1d0   : > { %vm910_vm3 = vcmp.gt.f32.partialorder %v909_v47, 0.0  ;;  %v911_v48 = vmul.f32 0.01, %v909_v47 }
 0x1d2   : > { %v912_v49 = vsel %vm910_vm3, %v909_v47, %v911_v48 }
 0x1d3   : > { %914 = vst.msk [vmem:[%s221_s15] sm:$0xff] %vm913_vm4, %v912_v49 }
 0x1d4 PF: > { %s17_s20 = sadd.s32 1, %s1308_s20  }
 0x1d5   : > { %p14_p4 = scmp.ge.s32.totalorder %s17_s20, 4  }
 0x1d7   :  { %16 = sbr.rel (!%p14_p4) target bundleno = 3 (0x3), region = 70 }

</bundles_post_ra>
